<compile_context>
chip_gen: v5e
topology: v5e:2x2
jax: 0.10.0
libtpu: 0.0.40
codegen_flags: <defaults>
</compile_context>

<pallas_src>
import jax
import jax.numpy as jnp
import numpy as np
from jax.experimental import pallas as pl
from jax.experimental.pallas import tpu as pltpu

NUM_FEATURES = 30       # ModuleAssociate2.num_features
P_IN, P_OUT = 100, 30   # self.P = ModuleC(100, 30)
C_IN, C_OUT = 60, 2     # self.C = ModuleC(60, 2)


def _associate2_kernel(oo_ref, wp_ref, bp_ref, w1big_ref, bias_ref, out_ref):
    """Grid step (i, j) produces output-slab rows [i*TI, (i+1)*TI) and lanes
    [j*TL, (j+1)*TL) of the lane-dense (n, 2n) result:
        slab[r, 2q+c] = (P(oo)[r] @ Wc1)[c] + R[q, c] + bc[c]
    i.e. rows r*n + q of the (n*n, 2) output.  R and bc are pre-folded into
    bias_ref by the wrapper, so the epilogue is one matmul + one add."""
    b_tile = (jnp.dot(oo_ref[...], wp_ref[...],
                      preferred_element_type=jnp.float32) + bp_ref[...])
    out_ref[...] = (jnp.dot(b_tile, w1big_ref[...],
                            preferred_element_type=jnp.float32)
                    + bias_ref[...]).astype(out_ref.dtype)


def module_associate2(oo, wp, bp, wc, bc):
    """oo: (n, 100) f32. Linear weights are stored transposed, i.e. shape
    (in_features, out_features): wp (100, 30), bp (1, 30), wc (60, 2), bc (1, 2).
    Returns (n*n, 2) f32 where row (i*n + j) = C(cat(P(oo)[i], P(oo)[j]))."""
    n = oo.shape[0]
    two_n = 2 * n
    wc1 = wc[:NUM_FEATURES, :]        # applies to the expand_way_1 half
    wc2 = wc[NUM_FEATURES:, :]        # applies to the expand_way_2 half

    # --- tiny XLA pre-pass (n x 100 x 30 x 2 flops; negligible) ---------------
    # R[j, c] = (P(oo) @ Wc2)[j, c]; interleave row-major into a lane-dense row
    # and fold the output bias in:  bias_row[0, 2j+c] = bc[c] + R[j, c].
    b_full = oo @ wp + bp                                     # (n, 30)
    rflat = (b_full @ wc2).reshape(1, two_n)                  # (1, 2n)
    bias_row = jnp.tile(bc.reshape(1, C_OUT), (1, n)) + rflat  # (1, 2n)

    # Lane-dense copy of the left weight: column (2j + c) <- Wc1 column c.
    w1big = jnp.tile(wc1, (1, n))                             # (30, 2n)

    # --- tiling ---------------------------------------------------------------
    slab_bytes = 4 * n * two_n
    if slab_bytes <= (1 << 20):
        # Small slab: one step, everything full-dim (no (8,128) constraints).
        ti = n
    else:
        # >=4 stateless row tiles so writeback double-buffers and both v7x
        # TensorCores engage; rows per tile a multiple of 8, between 64 and 256.
        ti = max(64, min(256, ((n // 4) // 8) * 8))
        ti = min(ti, n)

    # Lane-axis tiling only when the lane extent is large (keeps w1big/out tiles
    # inside v7x's 64 MiB VMEM at big n while staying lane-dense).
    tl = 2048 if two_n > 4096 else two_n

    grid = (pl.cdiv(n, ti), pl.cdiv(two_n, tl))

    # Per-step working set (double-buffered by the pipeline) -> explicit VMEM
    # limit with headroom, capped below v7x's 64 MiB physical VMEM.
    tile_words = (ti * P_IN + P_IN * P_OUT + P_OUT + P_OUT * tl + tl + ti * tl)
    vmem_limit = int(min(max(4 * 4 * tile_words + (4 << 20), 8 << 20), 56 << 20))

    slab = pl.pallas_call(
        _associate2_kernel,
        out_shape=jax.ShapeDtypeStruct((n, two_n), jnp.float32),
        grid_spec=pltpu.PrefetchScalarGridSpec(
            num_scalar_prefetch=0,
            grid=grid,
            in_specs=[
                pl.BlockSpec((ti, P_IN), lambda i, j: (i, 0)),      # oo rows of tile i
                pl.BlockSpec((P_IN, P_OUT), lambda i, j: (0, 0)),   # Wp
                pl.BlockSpec((1, P_OUT), lambda i, j: (0, 0)),      # bp
                pl.BlockSpec((P_OUT, tl), lambda i, j: (0, j)),     # Wc1 tiled lane-dense
                pl.BlockSpec((1, tl), lambda i, j: (0, j)),         # bc + R, lane-dense
            ],
            out_specs=pl.BlockSpec((ti, tl), lambda i, j: (i, j)),
        ),
        compiler_params=pltpu.CompilerParams(
            # Tiles are fully independent (no scratch carry): both axes parallel
            # so v7x can split the store-bound output across its TensorCores.
            dimension_semantics=("parallel", "parallel"),
            vmem_limit_bytes=vmem_limit,
        ),
    )(oo, wp, bp, w1big, bias_row)

    # Row-major (n, 2n) -> (n*n, 2): slab[i, 2j+c] == out[i*n + j, c].
    # Free metadata reshape outside the kernel.
    return slab.reshape(n * n, C_OUT)


def _reference(oo, wp, bp, wc, bc):
    """Plain-JAX mirror of the PyTorch forward (for a sanity check)."""
    n = oo.shape[0]
    B = oo @ wp + bp                                                  # P(oo)
    A1 = jnp.broadcast_to(B[:, None, :], (n, n, NUM_FEATURES)).reshape(n * n, NUM_FEATURES)
    A2 = jnp.broadcast_to(B[None, :, :], (n, n, NUM_FEATURES)).reshape(n * n, NUM_FEATURES)
    cat = jnp.concatenate([A1, A2], axis=1)                           # (n*n, 60)
    return cat @ wc + bc                                              # C(...)


if __name__ == "__main__":
    num_words = 8

    key = jax.random.PRNGKey(0)
    k_oo, k_wp, k_bp, k_wc, k_bc = jax.random.split(key, 5)

    # Deterministic synthetic parameters (Linear weights stored as (in, out) = weight.T).
    oo = jax.random.normal(k_oo, (num_words, P_IN), jnp.float32)
    wp = jax.random.normal(k_wp, (P_IN, P_OUT), jnp.float32) * 0.1
    bp = jax.random.normal(k_bp, (1, P_OUT), jnp.float32) * 0.1
    wc = jax.random.normal(k_wc, (C_IN, C_OUT), jnp.float32) * 0.1
    bc = jax.random.normal(k_bc, (1, C_OUT), jnp.float32) * 0.1

    out = module_associate2(oo, wp, bp, wc, bc)
    out = jax.block_until_ready(out)

    ref = _reference(oo, wp, bp, wc, bc)
    assert out.shape == (num_words * num_words, C_OUT), out.shape
    np.testing.assert_allclose(np.asarray(out), np.asarray(ref), rtol=1e-3, atol=1e-3)

    print("KERNEL_OK")
</pallas_src>

<mosaic_0001>
module attributes {stable_mosaic.version = 11 : i64} {
  func.func @_associate2_kernel(%arg0: i32, %arg1: i32, %arg2: memref<8x100xf32, #tpu.memory_space<vmem>>, %arg3: memref<100x30xf32, #tpu.memory_space<vmem>>, %arg4: memref<1x30xf32, #tpu.memory_space<vmem>>, %arg5: memref<30x16xf32, #tpu.memory_space<vmem>>, %arg6: memref<1x16xf32, #tpu.memory_space<vmem>>, %arg7: memref<8x16xf32, #tpu.memory_space<vmem>>) attributes {dimension_semantics = [#tpu.dimension_semantics<parallel>, #tpu.dimension_semantics<parallel>], iteration_bounds = array<i64: 1, 1>, scalar_prefetch = 0 : i64, scratch_operands = 0 : i64, tpu.core_type = #tpu.core_type<tc>, window_params = [{transform_indices = @transform_0, window_bounds = array<i64: 8, 100>}, {pipeline_mode = #tpu.pipeline_mode<synchronous>, transform_indices = @transform_1, window_bounds = array<i64: 100, 30>}, {pipeline_mode = #tpu.pipeline_mode<synchronous>, transform_indices = @transform_2, window_bounds = array<i64: 1, 30>}, {transform_indices = @transform_3, window_bounds = array<i64: 30, 16>}, {transform_indices = @transform_4, window_bounds = array<i64: 1, 16>}, {transform_indices = @transform_5, window_bounds = array<i64: 8, 16>}]} {
    %c0 = arith.constant 0 : index
    %c0_0 = arith.constant 0 : index
    %0 = vector.load %arg2[%c0, %c0_0] : memref<8x100xf32, #tpu.memory_space<vmem>>, vector<8x100xf32>
    %c0_1 = arith.constant 0 : index
    %c0_2 = arith.constant 0 : index
    %1 = vector.load %arg3[%c0_1, %c0_2] : memref<100x30xf32, #tpu.memory_space<vmem>>, vector<100x30xf32>
    %cst = arith.constant dense<0.000000e+00> : vector<8x30xf32>
    %2 = tpu.matmul %0, %1, %cst {dimension_numbers = #tpu.dot_dimension_numbers<[1], [0], [0], [1], [0, 0, 1, 1], [], []>} : vector<8x100xf32>, vector<100x30xf32>, vector<8x30xf32> -> vector<8x30xf32>
    %c0_3 = arith.constant 0 : index
    %c0_4 = arith.constant 0 : index
    %3 = vector.load %arg4[%c0_3, %c0_4] : memref<1x30xf32, #tpu.memory_space<vmem>>, vector<1x30xf32>
    %4 = vector.broadcast %3 : vector<1x30xf32> to vector<8x30xf32>
    %5 = arith.addf %2, %4 : vector<8x30xf32>
    %c0_5 = arith.constant 0 : index
    %c0_6 = arith.constant 0 : index
    %6 = vector.load %arg5[%c0_5, %c0_6] : memref<30x16xf32, #tpu.memory_space<vmem>>, vector<30x16xf32>
    %cst_7 = arith.constant dense<0.000000e+00> : vector<8x16xf32>
    %7 = tpu.matmul %5, %6, %cst_7 {dimension_numbers = #tpu.dot_dimension_numbers<[1], [0], [0], [1], [0, 0, 1, 1], [], []>} : vector<8x30xf32>, vector<30x16xf32>, vector<8x16xf32> -> vector<8x16xf32>
    %c0_8 = arith.constant 0 : index
    %c0_9 = arith.constant 0 : index
    %8 = vector.load %arg6[%c0_8, %c0_9] : memref<1x16xf32, #tpu.memory_space<vmem>>, vector<1x16xf32>
    %9 = vector.broadcast %8 : vector<1x16xf32> to vector<8x16xf32>
    %10 = arith.addf %7, %9 : vector<8x16xf32>
    %c0_10 = arith.constant 0 : index
    %c0_11 = arith.constant 0 : index
    %11 = vector.load %arg7[%c0_10, %c0_11] : memref<8x16xf32, #tpu.memory_space<vmem>>, vector<8x16xf32>
    tpu.vector_store %arg7[%c0_10, %c0_11], %10 {strides = array<i32>} : memref<8x16xf32, #tpu.memory_space<vmem>>, vector<8x16xf32>,
    return
  }
  func.func @transform_0(%arg0: i32, %arg1: i32) -> (i32, i32) {
    %c0_i32 = arith.constant 0 : i32
    %c0_i32_0 = arith.constant 0 : i32
    return %arg0, %c0_i32 : i32, i32
  }
  func.func @transform_1(%arg0: i32, %arg1: i32) -> (i32, i32) {
    %c0_i32 = arith.constant 0 : i32
    %c0_i32_0 = arith.constant 0 : i32
    %c0_i32_1 = arith.constant 0 : i32
    return %c0_i32, %c0_i32_0 : i32, i32
  }
  func.func @transform_2(%arg0: i32, %arg1: i32) -> (i32, i32) {
    %c0_i32 = arith.constant 0 : i32
    %c0_i32_0 = arith.constant 0 : i32
    %c0_i32_1 = arith.constant 0 : i32
    return %c0_i32, %c0_i32_0 : i32, i32
  }
  func.func @transform_3(%arg0: i32, %arg1: i32) -> (i32, i32) {
    %c0_i32 = arith.constant 0 : i32
    %c0_i32_0 = arith.constant 0 : i32
    return %c0_i32, %arg1 : i32, i32
  }
  func.func @transform_4(%arg0: i32, %arg1: i32) -> (i32, i32) {
    %c0_i32 = arith.constant 0 : i32
    %c0_i32_0 = arith.constant 0 : i32
    return %c0_i32, %arg1 : i32, i32
  }
  func.func @transform_5(%arg0: i32, %arg1: i32) -> (i32, i32) {
    %c0_i32 = arith.constant 0 : i32
    return %arg0, %arg1 : i32, i32
  }
}

</mosaic_0001>

<bundles_post_ra>
// kernel: tpu_custom_call.1
= control target key start
LH: loop header
LB: loop body
LE: loop exit
PB: predicated region body
PF: predicated region fallthrough
CT: control target
= control target key end

     0   :  { %vm43_vm0 = vcmask 1043456   ;;  %vm79_vm1 = vcmask 1045504   ;;  %s248_s0 = inlined_call_operand.vmem [shape: f32[8,100], index: 0, kind: input, shape index: {}]   ;;  %s249_s1 = inlined_call_operand.vmem [shape: f32[100,30], index: 1, kind: input, shape index: {}]   ;;  %s250_s2 = inlined_call_operand.vmem [shape: f32[1,30], index: 2, kind: input, shape index: {}]   ;;  %s251_s3 = inlined_call_operand.vmem [shape: f32[30,16], index: 3, kind: input, shape index: {}]   ;;  %s252_s4 = inlined_call_operand.vmem [shape: f32[1,16], index: 4, kind: input, shape index: {}]   ;;  %s253_s5 = inlined_call_operand.hbm [shape: f32[8,16], index: 5, kind: output, shape index: {}]  }
   0x1   :  { %v34_v0 = vld [vmem:[%s249_s1 + $0x60] sm:$0xf]  ;;  %v33_v1 = vld [vmem:[%s249_s1 + $0x58] sm:$0xff]  ;;  %v32_v2 = vld [vmem:[%s249_s1 + $0x50] sm:$0xff] }
   0x2   :  { %121 = vmatpush.msk.msra.mxu0 %vm43_vm0, %v34_v0  ;;  %v31_v3 = vld [vmem:[%s249_s1 + $0x48] sm:$0xff]  ;;  %v70_v4 = vld [vmem:[%s251_s3 + $0x18] sm:$0x3f]  ;;  %v69_v5 = vld [vmem:[%s251_s3 + $0x10] sm:$0xff] }
   0x3   :  { %123 = vmatpush.msk.msra.mxu1 %vm79_vm1, %v70_v4  ;;  %v30_v6 = vld [vmem:[%s249_s1 + $0x40] sm:$0xff] }
   0x4   :  { %51 = vmatpush.msra.mxu0 %v33_v1 }
   0x6   :  { %52 = vmatpush.msra.mxu0 %v32_v2 }
   0x7   :  { %10 = vsyncpa [#allocation3], 0  ;;  %96 = vmatpush.msra.mxu1 %v69_v5  ;;  %v29_v7 = vld [vmem:[%s249_s1 + $0x38] sm:$0xff]  ;;  %v28_v8 = vld [vmem:[%s249_s1 + $0x30] sm:$0xff]  ;;  %vm39_vm2 = vcmask 818176   ;;  %vm75_vm3 = vcmask 244736  }
   0x8   :  { %53 = vmatpush.msra.mxu0 %v31_v3  ;;  %v27_v9 = vld [vmem:[%s249_s1 + $0x28] sm:$0xff]  ;;  %v26_v10 = vld [vmem:[%s249_s1 + $0x20] sm:$0xff]  ;;  %v25_v11 = vld [vmem:[%s249_s1 + $0x18] sm:$0xff]  ;;  %s154_s6 = smov [#allocation2]   ;;  %s112_s10 = sshll.u32 %s253_s5, 4  ;;  %vm103_vm4 = vcmask 130048   ;;  %s113_s10 = int_to_ptr.hbm [resolvable:$true] %s112_s10 }
   0x9   :  { %v24_v12 = vld [vmem:[%s249_s1 + $0x10] sm:$0xff]  ;;  %v23_v13 = vld [vmem:[%s249_s1 + $0x8] sm:$0xff]  ;;  %v22_v14 = vld [vmem:[%s249_s1] sm:$0xff]  ;;  %s110_s7 = sshll.u32 %s154_s6, 4  ;;  %s111_s7 = int_to_ptr.vmem [resolvable:$true] %s110_s7 }
   0xa   :  { %54 = vmatpush.msra.mxu0 %v30_v6  ;;  %v21_v15 = vld [vmem:[%s248_s0] sm:$0xff]  ;;  %v68_v16 = vld [vmem:[%s251_s3 + $0x8] sm:$0xff] }
   0xb   :  { %97 = vmatpush.msra.mxu1 %v68_v16  ;;  %v67_v17 = vld [vmem:[%s251_s3] sm:$0xff] }
   0xc   :  { %55 = vmatpush.msra.mxu0 %v29_v7  ;;  %v126_v18 = vld [vmem:[%s250_s2] ss:$0 sm:$0xff] }
   0xd   :  { %98 = vmatpush.msra.mxu1 %v67_v17  ;;  %v127_v21 = vld [vmem:[%s252_s4] ss:$0 sm:$0xff] }
   0xe   :  { %56 = vmatpush.msra.mxu0 %v28_v8 }
  0x10   :  { %57 = vmatpush.msra.mxu0 %v27_v9 }
  0x12   :  { %58 = vmatpush.msra.mxu0 %v26_v10 }
  0x14   :  { %59 = vmatpush.msra.mxu0 %v25_v11 }
  0x16   :  { %60 = vmatpush.msra.mxu0 %v24_v12 }
  0x18   :  { %61 = vmatpush.msra.mxu0 %v23_v13 }
  0x1a   :  { %62 = vmatpush.msra.mxu0 %v22_v14 }
  0x1b   :  { %122 = vmatmul.msk.f32.vlgmr.msra.gmra.mxu0 %vm39_vm2, %v21_v15 }
  0x98   :  { %v64_v19 = vpop.f32.mrf.mxu0 }
  0x99   :  { %v65_v20 = vadd.f32 %v126_v18, %v64_v19 }
  0x9b   :  { %124 = vmatmul.msk.f32.vlgmr.msra.gmra.mxu1 %vm75_vm3, %v65_v20 }
 0x118   :  { %v100_v22 = vpop.f32.mrf.mxu1 }
 0x119   :  { %v101_v23 = vadd.f32 %v127_v21, %v100_v22 }
 0x11b   :  { %104 = vst.msk [vmem:[#allocation2] sm:$0xff] %vm103_vm4, %v101_v23 }
 0x11c   :  { %115 = dma.vmem_to_hbm [thread:$0]  %s111_s7, 128, %s113_s10, [#allocation3]  }
 0x11d   :  { %152 = dma.done.wait [#allocation3], 128  }
 0x11e   :  { %153 = vsyncadd [#allocation3], 4294967168 }
 0x11f   :  { %120 = vsyncpa [#allocation3], 1 }

</bundles_post_ra>
